<compile_context>
chip_gen: v7x
topology: tpu7x:2x2x1
jax: 0.10.0
libtpu: 0.0.40
codegen_flags: <defaults>
</compile_context>

<pallas_src>
import math

import jax
import jax.numpy as jnp
import numpy as np
from jax.experimental import pallas as pl
from jax.experimental.pallas import tpu as pltpu

# ---------------------------------------------------------------------------
# Small problem sizes consistent with the module's forward
# ---------------------------------------------------------------------------
B = 2          # batch
S = 4          # number of CoT "steps" (so S-1 diffusion predictions)
D = 32         # hidden size (768 in the real model)
Q = 5          # question length (token ids)
T = 3          # answer length (token ids)
V = 64         # vocab size (50257 in the real model)
DIFFUSION_STEPS = 100


# ---------------------------------------------------------------------------
# Fused kernel: diffusion-CoT MSE loss + answer cross-entropy loss
# ---------------------------------------------------------------------------
def _make_fused_kernel(inv_mse_den: float, inv_batch: float):
    """inv_mse_den = 1 / (B*(S-1)*D); inv_batch = 1 / B (CE 'mean over batch')."""

    def kernel(steps_prev_ref, x0_ref, noise_ref, c0_ref, c1_ref, qrep_ref,
               wa_top_ref, wa_bot_ref, ba_ref,
               wd_top_ref, wd_bot_ref, bd_ref,
               h_ref, lmw_ref, lmb_ref, lab_ref, loss_ref):
        bf16 = jnp.bfloat16
        f32 = jnp.float32

        # ---- diffusion.q_sample fused as an elementwise (VPU) pre-step, f32 ----
        x0 = x0_ref[...]                                                   # (N1, D)
        x_t = c0_ref[...] * x0 + c1_ref[...] * noise_ref[...]             # (N1, D)

        # ---- adaptor: cat([steps_i, x_t]) @ Wa + ba  ==  s@Wa_top + x@Wa_bot + ba
        emb = (jnp.dot(steps_prev_ref[...].astype(bf16), wa_top_ref[...],
                       preferred_element_type=f32)
               + jnp.dot(x_t.astype(bf16), wa_bot_ref[...],
                         preferred_element_type=f32)
               + ba_ref[...])                                              # (N1, D)

        # ---- denoiser (question-conditioned) producing pred_xstart ----
        pred = (jnp.dot(emb.astype(bf16), wd_top_ref[...],
                        preferred_element_type=f32)
                + jnp.dot(qrep_ref[...].astype(bf16), wd_bot_ref[...],
                          preferred_element_type=f32)
                + bd_ref[...])                                             # (N1, D)

        # ---- MSE(pred_xstart, steps[:, 1:]) accumulated in-register ----
        diff = pred - x0
        cot_sse = jnp.sum(diff * diff, axis=(0, 1), keepdims=True)         # (1, 1)

        # ---- answer branch: lm head + cross-entropy sum over all (token, batch) rows
        logits = (jnp.dot(h_ref[...].astype(bf16), lmw_ref[...],
                          preferred_element_type=f32)
                  + lmb_ref[...])                                          # (N2, V) f32
        n2, v = logits.shape
        m = jnp.max(logits, axis=-1, keepdims=True)
        lse = m + jnp.log(jnp.sum(jnp.exp(logits - m), axis=-1, keepdims=True))
        lse_sum = jnp.sum(lse, axis=(0, 1), keepdims=True)                 # (1, 1)

        # Labels live in SMEM: gather the target logits with scalar-broadcast compares
        # (n2 is a small, static trip-count -> fully unrolled).
        row_iota = jax.lax.broadcasted_iota(jnp.int32, (1, v), 1)
        picked_vec = jnp.zeros((1, v), f32)
        for r in range(n2):
            picked_vec = picked_vec + jnp.where(row_iota == lab_ref[r],
                                                logits[r:r + 1, :], 0.0)
        picked_sum = jnp.sum(picked_vec, axis=(0, 1), keepdims=True)       # (1, 1)

        total = cot_sse * inv_mse_den + (lse_sum - picked_sum) * inv_batch  # (1, 1)
        loss_ref[0, 0] = jnp.sum(total)                                     # scalar -> SMEM

    return kernel


def fused_forward_loss(steps_prev, x0, noise, c0, c1, q_rep,
                       wa_top, wa_bot, ba, wd_top, wd_bot, bd,
                       h_all, lm_w, lm_b, labels, *, batch_size):
    kernel = _make_fused_kernel(inv_mse_den=1.0 / float(x0.size),
                                inv_batch=1.0 / float(batch_size))
    vmem_inputs = 15
    in_specs = ([pl.BlockSpec(memory_space=pltpu.MemorySpace.VMEM)
                 for _ in range(vmem_inputs)]
                + [pl.BlockSpec(memory_space=pltpu.MemorySpace.SMEM)])   # labels
    out = pl.pallas_call(
        kernel,
        out_shape=jax.ShapeDtypeStruct((1, 1), jnp.float32),
        in_specs=in_specs,
        out_specs=pl.BlockSpec(memory_space=pltpu.MemorySpace.SMEM),     # scalar loss
    )(steps_prev, x0, noise, c0, c1, q_rep,
      wa_top, wa_bot, ba, wd_top, wd_bot, bd,
      h_all, lm_w, lm_b, labels)
    return out[0, 0]


# ---------------------------------------------------------------------------
# Diffusion schedule: squaredcos_cap_v2 (cosine), sigma_small, learn_sigma=False
# ---------------------------------------------------------------------------
def cosine_alphas_cumprod(num_steps):
    def alpha_bar(t):
        return math.cos((t + 0.008) / 1.008 * math.pi / 2) ** 2

    betas = []
    for i in range(num_steps):
        t1, t2 = i / num_steps, (i + 1) / num_steps
        betas.append(min(1.0 - alpha_bar(t2) / alpha_bar(t1), 0.999))
    alphas = 1.0 - np.asarray(betas, dtype=np.float64)
    return jnp.asarray(np.cumprod(alphas), dtype=jnp.float32)


# ---------------------------------------------------------------------------
# Parameters (deterministic synthetic init; weights stored bf16 for the MXU)
# ---------------------------------------------------------------------------
def init_params(key):
    ks = jax.random.split(key, 8)
    scale = 0.02
    bf16 = jnp.bfloat16
    return {
        "embed": scale * jax.random.normal(ks[0], (V, D), jnp.float32),
        # adaptor Linear(2D -> D) split into the half acting on steps[:, i] ("top")
        # and the half acting on x_t ("bot") so no (N, 2D) concat is ever built.
        "adaptor_w_top": (scale * jax.random.normal(ks[1], (D, D), jnp.float32)).astype(bf16),
        "adaptor_w_bot": (scale * jax.random.normal(ks[2], (D, D), jnp.float32)).astype(bf16),
        "adaptor_b": jnp.zeros((1, D), jnp.float32),
        # TODO(synk): this split linear denoiser stands in for GPT2LMHeadModel used as
        # the diffusion sample_fn inside p_sample_loop (full reverse sampling not reproduced).
        "denoise_w_top": (scale * jax.random.normal(ks[3], (D, D), jnp.float32)).astype(bf16),
        "denoise_w_bot": (scale * jax.random.normal(ks[4], (D, D), jnp.float32)).astype(bf16),
        "denoise_b": jnp.zeros((1, D), jnp.float32),
        "lm_head_w": (scale * jax.random.normal(ks[5], (D, V), jnp.float32)).astype(bf16),
        "lm_head_b": jnp.zeros((1, V), jnp.float32),
        "alphas_cumprod": cosine_alphas_cumprod(DIFFUSION_STEPS),
    }


# ---------------------------------------------------------------------------
# Forward (mirrors DiffusiveCoT.forward control flow; single fused kernel launch)
# ---------------------------------------------------------------------------
def diffusive_cot_forward(params, question, steps, answer, answer_label, key):
    b, s, d = steps.shape
    t = answer.shape[1]
    embed = params["embed"]

    q_emb = embed[question]                      # (B, Q, D)
    # TODO(synk): question conditioning `z` fed to the GPT2 sample_fn is approximated
    # by a mean-pooled question embedding.
    q_ctx = jnp.mean(q_emb, axis=1)              # (B, D)
    answer_emb = embed[answer]                   # (B, T, D)

    # All S-1 diffusion steps are independent -> draw randomness for all at once
    # (same distribution as the per-step torch.randint / randn_like in the reference).
    key, k_t, k_n = jax.random.split(key, 3)
    timestep = jax.random.randint(k_t, (b, s - 1), 0, DIFFUSION_STEPS)
    noise = jax.random.normal(k_n, (b, s - 1, d), jnp.float32)

    acp = params["alphas_cumprod"]
    n1 = b * (s - 1)
    c0 = jnp.sqrt(acp[timestep]).reshape(n1, 1)          # sqrt(acp[t])
    c1 = jnp.sqrt(1.0 - acp[timestep]).reshape(n1, 1)    # sqrt(1 - acp[t])

    steps_prev = steps[:, :-1, :].reshape(n1, d)         # conditions the adaptor
    x0 = steps[:, 1:, :].reshape(n1, d)                  # q_sample input + MSE target
    noise_rows = noise.reshape(n1, d)
    q_rep = jnp.repeat(q_ctx, s - 1, axis=0)             # row b*(S-1)+i -> q_ctx[b]

    # Answer rows, token-major: token 0 uses steps[:, -1]; token i>0 uses answer_emb[:, i-1].
    # answer_loss = sum_t CE_mean_over_batch(logits_t, answer_label[:, t])
    # TODO(synk): GPT2 past_key_values carry-over between answer tokens not reproduced
    # (lm head applied per-token without transformer context).
    h_tok = jnp.concatenate([steps[:, -1:, :], answer_emb[:, :-1, :]], axis=1)   # (B, T, D)
    h_all = jnp.transpose(h_tok, (1, 0, 2)).reshape(t * b, d)                    # (T*B, D)
    labels = answer_label.T.reshape(-1).astype(jnp.int32)                        # (T*B,)

    return fused_forward_loss(
        steps_prev, x0, noise_rows, c0, c1, q_rep,
        params["adaptor_w_top"], params["adaptor_w_bot"], params["adaptor_b"],
        params["denoise_w_top"], params["denoise_w_bot"], params["denoise_b"],
        h_all, params["lm_head_w"], params["lm_head_b"], labels,
        batch_size=b)


# ---------------------------------------------------------------------------
if __name__ == "__main__":
    root = jax.random.PRNGKey(0)
    k_param, k_q, k_s, k_a, k_al, k_fwd = jax.random.split(root, 6)

    params = init_params(k_param)

    question = jax.random.randint(k_q, (B, Q), 0, V)             # token ids
    steps = jax.random.normal(k_s, (B, S, D), jnp.float32)       # CoT step embeddings
    answer = jax.random.randint(k_a, (B, T), 0, V)               # answer token ids
    answer_label = jax.random.randint(k_al, (B, T), 0, V)        # CE targets

    forward = jax.jit(diffusive_cot_forward)
    loss = forward(params, question, steps, answer, answer_label, k_fwd)
    loss = jax.block_until_ready(loss)
    assert jnp.isfinite(loss), "loss is not finite"
    print("KERNEL_OK")
</pallas_src>

<mosaic_0001>
module attributes {stable_mosaic.version = 11 : i64} {
  func.func @kernel(%arg0: memref<6x32xf32, #tpu.memory_space<vmem>>, %arg1: memref<6x32xf32, #tpu.memory_space<vmem>>, %arg2: memref<6x32xf32, #tpu.memory_space<vmem>>, %arg3: memref<6x1xf32, #tpu.memory_space<vmem>>, %arg4: memref<6x1xf32, #tpu.memory_space<vmem>>, %arg5: memref<6x32xf32, #tpu.memory_space<vmem>>, %arg6: memref<32x32xbf16, #tpu.memory_space<vmem>>, %arg7: memref<32x32xbf16, #tpu.memory_space<vmem>>, %arg8: memref<1x32xf32, #tpu.memory_space<vmem>>, %arg9: memref<32x32xbf16, #tpu.memory_space<vmem>>, %arg10: memref<32x32xbf16, #tpu.memory_space<vmem>>, %arg11: memref<1x32xf32, #tpu.memory_space<vmem>>, %arg12: memref<6x32xf32, #tpu.memory_space<vmem>>, %arg13: memref<32x64xbf16, #tpu.memory_space<vmem>>, %arg14: memref<1x64xf32, #tpu.memory_space<vmem>>, %arg15: memref<6xi32, #tpu.memory_space<smem>>, %arg16: memref<1x1xf32, #tpu.memory_space<smem>>) attributes {dimension_semantics = [], scalar_prefetch = 0 : i64, scratch_operands = 0 : i64, tpu.core_type = #tpu.core_type<tc>} {
    %c0 = arith.constant 0 : index
    %c0_0 = arith.constant 0 : index
    %0 = vector.load %arg1[%c0, %c0_0] : memref<6x32xf32, #tpu.memory_space<vmem>>, vector<6x32xf32>
    %c0_1 = arith.constant 0 : index
    %c0_2 = arith.constant 0 : index
    %1 = vector.load %arg3[%c0_1, %c0_2] : memref<6x1xf32, #tpu.memory_space<vmem>>, vector<6x1xf32>
    %2 = vector.broadcast %1 : vector<6x1xf32> to vector<6x32xf32>
    %3 = arith.mulf %2, %0 : vector<6x32xf32>
    %c0_3 = arith.constant 0 : index
    %c0_4 = arith.constant 0 : index
    %4 = vector.load %arg4[%c0_3, %c0_4] : memref<6x1xf32, #tpu.memory_space<vmem>>, vector<6x1xf32>
    %c0_5 = arith.constant 0 : index
    %c0_6 = arith.constant 0 : index
    %5 = vector.load %arg2[%c0_5, %c0_6] : memref<6x32xf32, #tpu.memory_space<vmem>>, vector<6x32xf32>
    %6 = vector.broadcast %4 : vector<6x1xf32> to vector<6x32xf32>
    %7 = arith.mulf %6, %5 : vector<6x32xf32>
    %8 = arith.addf %3, %7 : vector<6x32xf32>
    %c0_7 = arith.constant 0 : index
    %c0_8 = arith.constant 0 : index
    %9 = vector.load %arg0[%c0_7, %c0_8] : memref<6x32xf32, #tpu.memory_space<vmem>>, vector<6x32xf32>
    %10 = arith.truncf %9 : vector<6x32xf32> to vector<6x32xbf16>
    %c0_9 = arith.constant 0 : index
    %c0_10 = arith.constant 0 : index
    %11 = vector.load %arg6[%c0_9, %c0_10] : memref<32x32xbf16, #tpu.memory_space<vmem>>, vector<32x32xbf16>
    %cst = arith.constant dense<0.000000e+00> : vector<6x32xf32>
    %12 = tpu.matmul %10, %11, %cst {dimension_numbers = #tpu.dot_dimension_numbers<[1], [0], [0], [1], [0, 0, 1, 1], [], []>} : vector<6x32xbf16>, vector<32x32xbf16>, vector<6x32xf32> -> vector<6x32xf32>
    %13 = arith.truncf %8 : vector<6x32xf32> to vector<6x32xbf16>
    %c0_11 = arith.constant 0 : index
    %c0_12 = arith.constant 0 : index
    %14 = vector.load %arg7[%c0_11, %c0_12] : memref<32x32xbf16, #tpu.memory_space<vmem>>, vector<32x32xbf16>
    %cst_13 = arith.constant dense<0.000000e+00> : vector<6x32xf32>
    %15 = tpu.matmul %13, %14, %cst_13 {dimension_numbers = #tpu.dot_dimension_numbers<[1], [0], [0], [1], [0, 0, 1, 1], [], []>} : vector<6x32xbf16>, vector<32x32xbf16>, vector<6x32xf32> -> vector<6x32xf32>
    %16 = arith.addf %12, %15 : vector<6x32xf32>
    %c0_14 = arith.constant 0 : index
    %c0_15 = arith.constant 0 : index
    %17 = vector.load %arg8[%c0_14, %c0_15] : memref<1x32xf32, #tpu.memory_space<vmem>>, vector<1x32xf32>
    %18 = vector.broadcast %17 : vector<1x32xf32> to vector<6x32xf32>
    %19 = arith.addf %16, %18 : vector<6x32xf32>
    %20 = arith.truncf %19 : vector<6x32xf32> to vector<6x32xbf16>
    %c0_16 = arith.constant 0 : index
    %c0_17 = arith.constant 0 : index
    %21 = vector.load %arg9[%c0_16, %c0_17] : memref<32x32xbf16, #tpu.memory_space<vmem>>, vector<32x32xbf16>
    %cst_18 = arith.constant dense<0.000000e+00> : vector<6x32xf32>
    %22 = tpu.matmul %20, %21, %cst_18 {dimension_numbers = #tpu.dot_dimension_numbers<[1], [0], [0], [1], [0, 0, 1, 1], [], []>} : vector<6x32xbf16>, vector<32x32xbf16>, vector<6x32xf32> -> vector<6x32xf32>
    %c0_19 = arith.constant 0 : index
    %c0_20 = arith.constant 0 : index
    %23 = vector.load %arg5[%c0_19, %c0_20] : memref<6x32xf32, #tpu.memory_space<vmem>>, vector<6x32xf32>
    %24 = arith.truncf %23 : vector<6x32xf32> to vector<6x32xbf16>
    %c0_21 = arith.constant 0 : index
    %c0_22 = arith.constant 0 : index
    %25 = vector.load %arg10[%c0_21, %c0_22] : memref<32x32xbf16, #tpu.memory_space<vmem>>, vector<32x32xbf16>
    %cst_23 = arith.constant dense<0.000000e+00> : vector<6x32xf32>
    %26 = tpu.matmul %24, %25, %cst_23 {dimension_numbers = #tpu.dot_dimension_numbers<[1], [0], [0], [1], [0, 0, 1, 1], [], []>} : vector<6x32xbf16>, vector<32x32xbf16>, vector<6x32xf32> -> vector<6x32xf32>
    %27 = arith.addf %22, %26 : vector<6x32xf32>
    %c0_24 = arith.constant 0 : index
    %c0_25 = arith.constant 0 : index
    %28 = vector.load %arg11[%c0_24, %c0_25] : memref<1x32xf32, #tpu.memory_space<vmem>>, vector<1x32xf32>
    %29 = vector.broadcast %28 : vector<1x32xf32> to vector<6x32xf32>
    %30 = arith.addf %27, %29 : vector<6x32xf32>
    %31 = arith.subf %30, %0 : vector<6x32xf32>
    %32 = arith.mulf %31, %31 : vector<6x32xf32>
    %33 = vector.shape_cast %32 : vector<6x32xf32> to vector<1x6x32xf32>
    %cst_26 = arith.constant dense<0.000000e+00> : vector<1xf32>
    %34 = vector.multi_reduction <add>, %33, %cst_26 [1, 2] : vector<1x6x32xf32> to vector<1xf32>
    %35 = vector.shape_cast %34 : vector<1xf32> to vector<1x1x1xf32>
    %36 = vector.extract %35[0, 0, 0] : f32 from vector<1x1x1xf32>
    %37 = vector.broadcast %36 : f32 to vector<1x1xf32>
    %c0_27 = arith.constant 0 : index
    %c0_28 = arith.constant 0 : index
    %38 = vector.load %arg12[%c0_27, %c0_28] : memref<6x32xf32, #tpu.memory_space<vmem>>, vector<6x32xf32>
    %39 = arith.truncf %38 : vector<6x32xf32> to vector<6x32xbf16>
    %c0_29 = arith.constant 0 : index
    %c0_30 = arith.constant 0 : index
    %40 = vector.load %arg13[%c0_29, %c0_30] : memref<32x64xbf16, #tpu.memory_space<vmem>>, vector<32x64xbf16>
    %cst_31 = arith.constant dense<0.000000e+00> : vector<6x64xf32>
    %41 = tpu.matmul %39, %40, %cst_31 {dimension_numbers = #tpu.dot_dimension_numbers<[1], [0], [0], [1], [0, 0, 1, 1], [], []>} : vector<6x32xbf16>, vector<32x64xbf16>, vector<6x64xf32> -> vector<6x64xf32>
    %c0_32 = arith.constant 0 : index
    %c0_33 = arith.constant 0 : index
    %42 = vector.load %arg14[%c0_32, %c0_33] : memref<1x64xf32, #tpu.memory_space<vmem>>, vector<1x64xf32>
    %43 = vector.broadcast %42 : vector<1x64xf32> to vector<6x64xf32>
    %44 = arith.addf %41, %43 : vector<6x64xf32>
    %cst_34 = arith.constant dense<0xFF800000> : vector<6xf32>
    %45 = vector.multi_reduction <maximumf>, %44, %cst_34 [1] : vector<6x64xf32> to vector<6xf32>
    %46 = vector.shape_cast %45 : vector<6xf32> to vector<6x1xf32>
    %47 = vector.broadcast %46 : vector<6x1xf32> to vector<6x64xf32>
    %48 = arith.subf %44, %47 : vector<6x64xf32>
    %49 = math.exp %48 : vector<6x64xf32>
    %cst_35 = arith.constant dense<0.000000e+00> : vector<6xf32>
    %50 = vector.multi_reduction <add>, %49, %cst_35 [1] : vector<6x64xf32> to vector<6xf32>
    %51 = vector.shape_cast %50 : vector<6xf32> to vector<6x1xf32>
    %52 = math.log %51 : vector<6x1xf32>
    %53 = arith.addf %46, %52 : vector<6x1xf32>
    %54 = vector.shape_cast %53 : vector<6x1xf32> to vector<1x6x1xf32>
    %cst_36 = arith.constant dense<0.000000e+00> : vector<1xf32>
    %55 = vector.multi_reduction <add>, %54, %cst_36 [1, 2] : vector<1x6x1xf32> to vector<1xf32>
    %56 = vector.shape_cast %55 : vector<1xf32> to vector<1x1x1xf32>
    %57 = vector.extract %56[0, 0, 0] : f32 from vector<1x1x1xf32>
    %58 = vector.broadcast %57 : f32 to vector<1x1xf32>
    %59 = tpu.iota {dimensions = array<i32: 1>} : vector<1x64xi32>
    %cst_37 = arith.constant 0.000000e+00 : f32
    %60 = vector.broadcast %cst_37 : f32 to vector<1x64xf32>
    %c0_38 = arith.constant 0 : index
    %61 = memref.load %arg15[%c0_38] : memref<6xi32, #tpu.memory_space<smem>>
    %62 = vector.broadcast %61 : i32 to vector<1x64xi32>
    %63 = arith.cmpi eq, %59, %62 : vector<1x64xi32>
    %64 = vector.extract_strided_slice %44 {offsets = [0, 0], sizes = [1, 64], strides = [1, 1]} : vector<6x64xf32> to vector<1x64xf32>
    %cst_39 = arith.constant 0.000000e+00 : f32
    %65 = vector.broadcast %cst_39 : f32 to vector<1x64xf32>
    %66 = arith.select %63, %64, %65 : vector<1x64xi1>, vector<1x64xf32>
    %67 = arith.addf %60, %66 : vector<1x64xf32>
    %c1 = arith.constant 1 : index
    %68 = memref.load %arg15[%c1] : memref<6xi32, #tpu.memory_space<smem>>
    %69 = vector.broadcast %68 : i32 to vector<1x64xi32>
    %70 = arith.cmpi eq, %59, %69 : vector<1x64xi32>
    %71 = vector.extract_strided_slice %44 {offsets = [1, 0], sizes = [1, 64], strides = [1, 1]} : vector<6x64xf32> to vector<1x64xf32>
    %cst_40 = arith.constant 0.000000e+00 : f32
    %72 = vector.broadcast %cst_40 : f32 to vector<1x64xf32>
    %73 = arith.select %70, %71, %72 : vector<1x64xi1>, vector<1x64xf32>
    %74 = arith.addf %67, %73 : vector<1x64xf32>
    %c2 = arith.constant 2 : index
    %75 = memref.load %arg15[%c2] : memref<6xi32, #tpu.memory_space<smem>>
    %76 = vector.broadcast %75 : i32 to vector<1x64xi32>
    %77 = arith.cmpi eq, %59, %76 : vector<1x64xi32>
    %78 = vector.extract_strided_slice %44 {offsets = [2, 0], sizes = [1, 64], strides = [1, 1]} : vector<6x64xf32> to vector<1x64xf32>
    %cst_41 = arith.constant 0.000000e+00 : f32
    %79 = vector.broadcast %cst_41 : f32 to vector<1x64xf32>
    %80 = arith.select %77, %78, %79 : vector<1x64xi1>, vector<1x64xf32>
    %81 = arith.addf %74, %80 : vector<1x64xf32>
    %c3 = arith.constant 3 : index
    %82 = memref.load %arg15[%c3] : memref<6xi32, #tpu.memory_space<smem>>
    %83 = vector.broadcast %82 : i32 to vector<1x64xi32>
    %84 = arith.cmpi eq, %59, %83 : vector<1x64xi32>
    %85 = vector.extract_strided_slice %44 {offsets = [3, 0], sizes = [1, 64], strides = [1, 1]} : vector<6x64xf32> to vector<1x64xf32>
    %cst_42 = arith.constant 0.000000e+00 : f32
    %86 = vector.broadcast %cst_42 : f32 to vector<1x64xf32>
    %87 = arith.select %84, %85, %86 : vector<1x64xi1>, vector<1x64xf32>
    %88 = arith.addf %81, %87 : vector<1x64xf32>
    %c4 = arith.constant 4 : index
    %89 = memref.load %arg15[%c4] : memref<6xi32, #tpu.memory_space<smem>>
    %90 = vector.broadcast %89 : i32 to vector<1x64xi32>
    %91 = arith.cmpi eq, %59, %90 : vector<1x64xi32>
    %92 = vector.extract_strided_slice %44 {offsets = [4, 0], sizes = [1, 64], strides = [1, 1]} : vector<6x64xf32> to vector<1x64xf32>
    %cst_43 = arith.constant 0.000000e+00 : f32
    %93 = vector.broadcast %cst_43 : f32 to vector<1x64xf32>
    %94 = arith.select %91, %92, %93 : vector<1x64xi1>, vector<1x64xf32>
    %95 = arith.addf %88, %94 : vector<1x64xf32>
    %c5 = arith.constant 5 : index
    %96 = memref.load %arg15[%c5] : memref<6xi32, #tpu.memory_space<smem>>
    %97 = vector.broadcast %96 : i32 to vector<1x64xi32>
    %98 = arith.cmpi eq, %59, %97 : vector<1x64xi32>
    %99 = vector.extract_strided_slice %44 {offsets = [5, 0], sizes = [1, 64], strides = [1, 1]} : vector<6x64xf32> to vector<1x64xf32>
    %cst_44 = arith.constant 0.000000e+00 : f32
    %100 = vector.broadcast %cst_44 : f32 to vector<1x64xf32>
    %101 = arith.select %98, %99, %100 : vector<1x64xi1>, vector<1x64xf32>
    %102 = arith.addf %95, %101 : vector<1x64xf32>
    %103 = vector.shape_cast %102 : vector<1x64xf32> to vector<1x1x64xf32>
    %cst_45 = arith.constant dense<0.000000e+00> : vector<1xf32>
    %104 = vector.multi_reduction <add>, %103, %cst_45 [1, 2] : vector<1x1x64xf32> to vector<1xf32>
    %105 = vector.shape_cast %104 : vector<1xf32> to vector<1x1x1xf32>
    %106 = vector.extract %105[0, 0, 0] : f32 from vector<1x1x1xf32>
    %107 = vector.broadcast %106 : f32 to vector<1x1xf32>
    %cst_46 = arith.constant 0.00520833349 : f32
    %108 = vector.broadcast %cst_46 : f32 to vector<1x1xf32>
    %109 = arith.mulf %37, %108 : vector<1x1xf32>
    %110 = arith.subf %58, %107 : vector<1x1xf32>
    %cst_47 = arith.constant 5.000000e-01 : f32
    %111 = vector.broadcast %cst_47 : f32 to vector<1x1xf32>
    %112 = arith.mulf %110, %111 : vector<1x1xf32>
    %113 = arith.addf %109, %112 : vector<1x1xf32>
    %114 = vector.shape_cast %113 : vector<1x1xf32> to vector<1x1x1xf32>
    %cst_48 = arith.constant dense<0.000000e+00> : vector<1xf32>
    %115 = vector.multi_reduction <add>, %114, %cst_48 [1, 2] : vector<1x1x1xf32> to vector<1xf32>
    %116 = vector.shape_cast %115 : vector<1xf32> to vector<1x1x1xf32>
    %117 = vector.extract %116[0, 0, 0] : f32 from vector<1x1x1xf32>
    %c0_49 = arith.constant 0 : index
    %c0_50 = arith.constant 0 : index
    %118 = memref.load %arg16[%c0_49, %c0_50] : memref<1x1xf32, #tpu.memory_space<smem>>
    memref.store %117, %arg16[%c0_49, %c0_50] : memref<1x1xf32, #tpu.memory_space<smem>>
    return
  }
}

</mosaic_0001>

<bundles_post_ra>
// kernel: diffusive_cot_forward.3
= control target key start
LH: loop header
LB: loop body
LE: loop exit
PB: predicated region body
PF: predicated region fallthrough
CT: control target
= control target key end

     0   :  { %s853_s0 = inlined_call_operand.vmem [shape: f32[6,32], index: 0, kind: input, shape index: {}]   ;;  %s854_s1 = inlined_call_operand.vmem [shape: f32[6,32], index: 1, kind: input, shape index: {}]   ;;  %s855_s2 = inlined_call_operand.vmem [shape: f32[6,32], index: 2, kind: input, shape index: {}]   ;;  %s856_s3 = inlined_call_operand.vmem [shape: f32[6,1], index: 3, kind: input, shape index: {}]   ;;  %s857_s4 = inlined_call_operand.vmem [shape: f32[6,1], index: 4, kind: input, shape index: {}]   ;;  %s858_s5 = inlined_call_operand.vmem [shape: f32[6,32], index: 5, kind: input, shape index: {}]   ;;  %s859_s6 = inlined_call_operand.vmem [shape: bf16[32,32], index: 6, kind: input, shape index: {}]   ;;  %s860_s7 = inlined_call_operand.vmem [shape: bf16[32,32], index: 7, kind: input, shape index: {}]   ;;  %s861_s8 = inlined_call_operand.vmem [shape: f32[1,32], index: 8, kind: input, shape index: {}]   ;;  %s862_s9 = inlined_call_operand.vmem [shape: bf16[32,32], index: 9, kind: input, shape index: {}]   ;;  %s863_s10 = inlined_call_operand.vmem [shape: bf16[32,32], index: 10, kind: input, shape index: {}]   ;;  %s864_s11 = inlined_call_operand.vmem [shape: f32[1,32], index: 11, kind: input, shape index: {}]   ;;  %s865_s12 = inlined_call_operand.vmem [shape: f32[6,32], index: 12, kind: input, shape index: {}]   ;;  %s866_s13 = inlined_call_operand.vmem [shape: bf16[32,64], index: 13, kind: input, shape index: {}]   ;;  %s867_s14 = inlined_call_operand.vmem [shape: f32[1,64], index: 14, kind: input, shape index: {}]   ;;  %s868_s15 = inlined_call_operand.vmem [shape: s32[6], index: 15, kind: input, shape index: {}]   ;;  %s869_s16 = inlined_call_operand.hbm [shape: f32[1,1], index: 16, kind: output, shape index: {}]  }
   0x1   :  { %870 = sst [smem:[#allocation8_spill]] %s853_s0 }
   0x2   :  { %21 = vsyncpa [#allocation4], 0 }
   0x3   :  { %22 = vsyncpa [#allocation3], 0  ;;  %s59_s23 = sshll.u32 %s868_s15, 4  ;;  %s60_s23 = int_to_ptr.vmem [resolvable:$true] %s59_s23 }
   0x4   :  { %s638_s24 = scalar_lea.vmem %s60_s23, 16  ;;  %p643_p1 = scmp.lt.s32.totalorder %s60_s23, %s60_s23 }
   0x5   :  { %p639_p0 = scmp.ne.s32.totalorder %s60_s23, %s638_s24  ;;  %p644_p2 = scmp.lt.s32.totalorder %s638_s24, %s638_s24 }
   0x7   :  { %p645_p3 = por %p644_p2, %p643_p1 }
   0x9   :  { %p646_p4 = pnand %p645_p3, %p639_p0 }
   0xb   :  { %649 = shalt.err (!%p646_p4)
}
   0xc   :  { %s664_s25 = smov [#allocation2]  }
   0xd   :  { %62 = dma.vmem_to_smem %s60_s23, 16, %s664_s25, [#allocation4]  }
   0xe   :  { %660 = dma.done.wait [#allocation4], 16  }
   0xf   :  { %661 = vsyncadd [#allocation4], 4294967280 }
  0x10   :  { %66 = sfence }
  0x11   :  { %v69_v0 = vld [vmem:[%s856_s3] sm:$0x3f]  ;;  %v665_v1 = vmov 0   ;;  %v666_v4 = vmov 0.0   ;;  %v626_v6 = vld [vmem:[%s860_s7 + $0x8] sm:$0xff]   ;;  %s871_s22 = sld [smem:[#allocation8_spill]] }
  0x12   :  { %623 = vset.pattern.permute.xlu0 %v665_v1  ;;  %v624_v2 = vld [vmem:[%s860_s7] sm:$0xff]   ;;  %570 = vmatprep.subr.bf16.mxu0 %v666_v4  ;;  %v627_v7 = vld [vmem:[%s859_s6 + $0x8] sm:$0xff]   ;;  %vm108_vm0 = vcmask 261120   ;;  %vm667_vm1 = vmmov 0   ;;  %vm426_vm2 = vcmask 521216   ;;  %vm346_vm3 = vcmask 259072  }
  0x13   :  { %72 = vperm.xlu0 %623, %v69_v0   ;;  %v76_v3 = vld [vmem:[%s857_s4] sm:$0x3f]  ;;  %578 = vmatprep.subr.bf16.mxu1 %v666_v4  ;;  %v629_v19 = vld [vmem:[%s863_s10 + $0x8] sm:$0xff]   ;;  %s550_s4 = sld [smem:[#allocation2 + $0x1]]  ;;  %s453_s21 = sld [smem:[#allocation2]]  ;;  %vm439_vm10 = vcmask 5120  }
  0x14   :  { %v625_v5 = vld [vmem:[%s859_s6] sm:$0xff]   ;;  %571 = vmatpush3.bf16.msra.mxu0 %v624_v2  ;;  %574 = vmatprep.mubr.msk.bf16.mxu0 %vm667_vm1, %v666_v4  ;;  %v631_v23 = vld [vmem:[%s866_s13 + $0x8] sm:$0xff]   ;;  %v451_v2 = vlaneseq  ;;  %s552_s6 = sld [smem:[#allocation2 + $0x3]]  ;;  %s554_s7 = sld [smem:[#allocation2 + $0x5]]  ;;  %vm498_vm11 = vcmask 516096  }
  0x15   :  { %579 = vmatpush3.bf16.msra.mxu1 %v625_v5  ;;  %572 = vmatprep.subr.bf16.mxu0 %v666_v4  ;;  %v785_v11 = vld [vmem:[%s854_s1] sm:$0x3f]  ;;  %v633_v29 = vld [vmem:[%s862_s9 + $0x8] sm:$0xff]  }
  0x16   :  { %580 = vmatprep.subr.bf16.mxu1 %v666_v4  ;;  %582 = vmatprep.mubr.msk.bf16.mxu1 %vm667_vm1, %v666_v4  ;;  %v77_v12 = vld [vmem:[%s855_s2] sm:$0x3f]  ;;  %s650_s2 = scalar_lea.hbm %s869_s16, 16 }
  0x17   :  { %80 = vperm.xlu0 %623, %v76_v3   ;;  %v85_v8 = vld [vmem:[%s871_s22] sm:$0x3f]  ;;  %s551_s22 = sld [smem:[#allocation2 + $0x2]]  ;;  %v452_v3 = vand.u32 127, %v451_v2  ;;  %p651_p5 = scmp.ne.s32.totalorder %s869_s16, %s650_s2 }
  0x18   :  { %573 = vmatpush3.bf16.msra.mxu0 %v626_v6  ;;  %v86_v9 = vpack.c.bf16 %v85_v8, %v85_v8  ;;  %v628_v17 = vld [vmem:[%s863_s10] sm:$0xff]   ;;  %p654_p6 = scmp.lt.u32.totalorder %s650_s2, %s869_s16 }
  0x19   :  { %581 = vmatpush3.bf16.msra.mxu1 %v627_v7  ;;  %586 = vmatprep.subr.bf16.mxu0 %v666_v4  ;;  %v220_v20 = vld [vmem:[%s858_s5] sm:$0x3f]  ;;  %v454_v5 = vstv %s453_s21 }
  0x1a   :  { %594 = vmatprep.subr.bf16.mxu1 %v666_v4  ;;  %v221_v21 = vpack.c.bf16 %v220_v20, %v220_v20  ;;  %v630_v22 = vld [vmem:[%s866_s13] sm:$0xff]   ;;  %vm455_vm5 = vcmp.eq.s32.totalorder %v452_v3, %v454_v5  ;;  %p656_p7 = pnand %p654_p6, %p651_p5 }
  0x1b   :  { %v358_v24 = vld [vmem:[%s865_s12] sm:$0x3f] }
  0x1c   :  { %583 = vmatmul.mubr.msk.bf16.vlgmr.msra.gmra.mrb[0].mxu1 %vm108_vm0, %v86_v9  ;;  %v359_v25 = vpack.c.bf16 %v358_v24, %v358_v24  ;;  %v632_v26 = vld [vmem:[%s862_s9] sm:$0xff]   ;;  %v475_v9 = vstv %s552_s6 }
  0x1d   :  { %598 = vmatprep.mubr.msk.bf16.mxu1 %vm667_vm1, %v666_v4  ;;  %595 = vmatpush3.bf16.msra.mxu1 %v632_v26  ;;  %v538_v33 = vld [vmem:[%s861_s8] ss:$0 sm:$0xff]  ;;  %v467_v7 = vstv %s551_s22  ;;  %vm476_vm7 = vcmp.eq.s32.totalorder %v452_v3, %v475_v9 }
  0x1e   :  { %596 = vmatprep.subr.bf16.mxu1 %v666_v4  ;;  %v546_v44 = vld [vmem:[%s867_s14] ss:$0 sm:$0xff]  ;;  %vm468_vm6 = vcmp.eq.s32.totalorder %v452_v3, %v467_v7 }
  0x1f   :  { %v545_v57 = vld [vmem:[%s864_s11] ss:$0 sm:$0xff]  ;;  %s553_s11 = sld [smem:[#allocation2 + $0x4]] }
  0x21   :  { %597 = vmatpush3.bf16.msra.mxu1 %v633_v29 }
  0x92   :  { %v73_v10 = vpop.permute.xlu0 %72 }
  0x93   :  { %v75_v14 = vmul.f32 %v73_v10, %v785_v11 }
  0x96   :  { %v81_v13 = vpop.permute.xlu0 %80 }
  0x97   :  { %v83_v15 = vmul.f32 %v81_v13, %v77_v12 }
  0x99   :  { %v84_v16 = vadd.f32 %v83_v15, %v75_v14  ;;  %v483_v14 = vstv %s553_s11 }
  0x9a   :  { %vm484_vm8 = vcmp.eq.s32.totalorder %v452_v3, %v483_v14 }
  0x9b   :  { %v91_v18 = vpack.c.bf16 %v84_v16, %v84_v16 }
  0x9d   :  { %575 = vmatmul.mubr.msk.bf16.vlgmr.msra.gmra.mrb[0].mxu0 %vm108_vm0, %v91_v18  ;;  %v491_v18 = vstv %s554_s7 }
  0x9e   :  { %587 = vmatpush3.bf16.msra.mxu0 %v628_v17  ;;  %590 = vmatprep.mubr.msk.bf16.mxu0 %vm667_vm1, %v666_v4  ;;  %vm492_vm9 = vcmp.eq.s32.totalorder %v452_v3, %v491_v18 }
  0x9f   :  { %588 = vmatprep.subr.bf16.mxu0 %v666_v4 }
  0xa2   :  { %589 = vmatpush3.bf16.msra.mxu0 %v629_v19 }
  0xa3   :  { %602 = vmatprep.subr.bf16.mxu0 %v666_v4 }
  0xa5   :  { %591 = vmatmul.mubr.msk.bf16.vlgmr.msra.gmra.mrb[4].mxu0 %vm108_vm0, %v221_v21 }
  0xa6   :  { %603 = vmatpush3.bf16.msra.mxu0 %v630_v22  ;;  %606 = vmatprep.mubr.msk.bf16.mxu0 %vm667_vm1, %v666_v4 }
  0xa7   :  { %604 = vmatprep.subr.bf16.mxu0 %v666_v4  ;;  %v459_v4 = vstv %s550_s4 }
  0xa8   :  { %vm460_vm4 = vcmp.eq.s32.totalorder %v452_v3, %v459_v4 }
  0xaa   :  { %605 = vmatpush3.bf16.msra.mxu0 %v631_v23 }
  0xad   :  { %607 = vmatmul.mubr.msk.bf16.vlgmr.msra.gmra.mrb[8].mxu0 %vm108_vm0, %v359_v25 }
  0xef   :  { %v201_v27 = vpop.f32.mrb[0].mxu1 }
  0xf0   :  { %v584_v28 = vpop.f32.mrb[1].mxu1 }
  0xf1   :  { %v204_v30 = vpop.f32.mrb[2].mxu1 }
  0xf2   :  { %v585_v31 = vpop.f32.mrb[3].mxu1 }
 0x170   :  { %v146_v32 = vpop.f32.mrb[0].mxu0 }
 0x171   :  { %v202_v34 = vadd.f32 %v201_v27, %v146_v32  ;;  %v576_v35 = vpop.f32.mrb[1].mxu0 }
 0x172   :  { %v149_v36 = vpop.f32.mrb[2].mxu0 }
 0x173   :  { %v214_v37 = vadd.f32 %v538_v33, %v202_v34  ;;  %v577_v38 = vpop.f32.mrb[3].mxu0 }
 0x175   :  { %v215_v39 = vpack.c.bf16 %v214_v37, %v214_v37 }
 0x177   :  { %599 = vmatmul.mubr.msk.bf16.vlgmr.msra.gmra.mrb[4].mxu1 %vm108_vm0, %v215_v39 }
 0x178   :  { %v275_v40 = vpop.f32.mrb[4].mxu0 }
 0x179   :  { %v592_v41 = vpop.f32.mrb[5].mxu0 }
 0x17a   :  { %v278_v42 = vpop.f32.mrb[6].mxu0 }
 0x17b   :  { %v593_v43 = vpop.f32.mrb[7].mxu0 }
 0x180   :  { %v420_v45 = vpop.f32.mrb[8].mxu0 }
 0x181   :  { %v827_v46 = vadd.f32 %v546_v44, %v420_v45  ;;  %v608_v47 = vpop.f32.mrb[9].mxu0 }
 0x182   :  { %v423_v48 = vpop.f32.mrb[10].mxu0 }
 0x183   :  { %v609_v49 = vpop.f32.mrb[11].mxu0  ;;  %v427_v50 = vsel %vm426_vm2, %v827_v46, -inf  ;;  %v461_v6 = vsel %vm460_vm4, %v827_v46, 0.0  ;;  %v456_v10 = vsel %vm455_vm5, %v827_v46, 0.0  ;;  %v477_v16 = vsel %vm476_vm7, %v827_v46, 0.0 }
 0x184   :  { %428 = vmax.xlane.f32.xlu1 %v427_v50  ;;  %v463_v8 = vrot.slane %v461_v6, 1  ;;  %v479_v19 = vrot.slane %v477_v16, 3  ;;  %v485_v20 = vsel %vm484_vm8, %v827_v46, 0.0  ;;  %v493_v24 = vsel %vm492_vm9, %v827_v46, 0.0 }
 0x185   :  { %v487_v22 = vrot.slane %v485_v20, 4  ;;  %v495_v28 = vrot.slane %v493_v24, 5 }
 0x186   :  { %v465_v13 = vadd.f32 %v463_v8, %v456_v10 }
 0x211   :  { %v429_v51 = vpop.xlane.xlu1 %428 }
 0x212   :  { %v430_v52 = vsub.f32 %v827_v46, %v429_v51 }
 0x214   :  { %v431_v53 = vmul.f32 1.442695, %v430_v52 }
 0x216   :  { %634 = vpow2.f32 %v431_v53 }
 0x220   :  { %v635_v54 = vpop.eup %634 }
 0x221   :  { %v433_v55 = vsel %vm426_vm2, %v635_v54, 0.0 }
 0x222   :  { %434 = vadd.xlane.f32.xlu1 %v433_v55 }
 0x24a   :  { %v330_v56 = vpop.f32.mrb[4].mxu1 }
 0x24b   :  { %v331_v58 = vadd.f32 %v330_v56, %v275_v40  ;;  %v600_v59 = vpop.f32.mrb[5].mxu1 }
 0x24c   :  { %v333_v60 = vpop.f32.mrb[6].mxu1 }
 0x24d   :  { %v343_v61 = vadd.f32 %v545_v57, %v331_v58  ;;  %v601_v62 = vpop.f32.mrb[7].mxu1 }
 0x24f   :  { %v344_v63 = vsub.f32 %v343_v61, %v785_v11  ;;  %v469_v11 = vsel %vm468_vm6, %v827_v46, 0.0 }
 0x250   :  { %v471_v15 = vrot.slane %v469_v11, 2 }
 0x251   :  { %v345_v0 = vmul.f32 %v344_v63, %v344_v63 }
 0x252   :  { %v473_v17 = vadd.f32 %v471_v15, %v465_v13 }
 0x253   :  { %v347_v1 = vsel %vm346_vm3, %v345_v0, 0.0 }
 0x254   :  { %348 = vadd.xlane.f32.xlu0 %v347_v1  ;;  %v481_v21 = vadd.f32 %v479_v19, %v473_v17 }
 0x256   :  { %v489_v26 = vadd.f32 %v487_v22, %v481_v21 }
 0x258   :  { %v497_v30 = vadd.f32 %v495_v28, %v489_v26 }
 0x25a   :  { %v499_v31 = vsel %vm498_vm11, %v497_v30, 0.0 }
 0x2af   :  { %v435_v12 = vpop.xlane.xlu1 %434 }
 0x2b0   :  { %636 = vlog2.f32 %v435_v12 }
 0x2ba   :  { %v637_v23 = vpop.eup %636 }
 0x2bb   :  { %v437_v25 = vmul.f32 0.6931472, %v637_v23 }
 0x2bd   :  { %v438_v27 = vadd.f32 %v437_v25, %v429_v51 }
 0x2bf   :  { %v440_v29 = vsel %vm439_vm10, %v438_v27, 0.0 }
 0x2c0   :  { %441 = vadd.xlane.f32.xlu1 %v440_v29 }
 0x2c4   :  { %500 = vadd.xlane.f32.xlu1 %v499_v31 }
 0x2e1   :  { %v349_v32 = vpop.xlane.xlu0 %348 }
 0x2e2   :  { %v350_v33 = vrot.slane %v349_v32, 4 }
 0x2e4   :  { %v351_v34 = vadd.f32 %v350_v33, %v349_v32 }
 0x2e6   :  { %v352_v35 = vrot.slane %v351_v34, 2 }
 0x2e8   :  { %v353_v36 = vadd.f32 %v352_v35, %v351_v34 }
 0x2ea   :  { %v354_v37 = vrot.slane %v353_v36, 1 }
 0x2ec   :  { %v355_v38 = vadd.f32 %v354_v37, %v353_v36 }
 0x2ee   :  { %610 = vpush %v355_v38 }
 0x31f   :  { %s611_s23 = spop %610 }
 0x320   :  { %v357_v53 = vstv %s611_s23 }
 0x321   :  { %v510_v57 = vmul.f32 0.0052083335, %v357_v53 }
 0x34d   :  { %v442_v39 = vpop.xlane.xlu1 %441 }
 0x34e   :  { %v443_v40 = vrot.slane %v442_v39, 4 }
 0x350   :  { %v444_v41 = vadd.f32 %v443_v40, %v442_v39 }
 0x351   :  { %v501_v42 = vpop.xlane.xlu1 %500 }
 0x352   :  { %v445_v43 = vrot.slane %v444_v41, 2  ;;  %v502_v44 = vrot.slane %v501_v42, 4 }
 0x354   :  { %v503_v45 = vadd.f32 %v502_v44, %v501_v42  ;;  %v446_v46 = vadd.f32 %v445_v43, %v444_v41 }
 0x356   :  { %v504_v47 = vrot.slane %v503_v45, 2  ;;  %v447_v48 = vrot.slane %v446_v46, 1 }
 0x358   :  { %v505_v49 = vadd.f32 %v504_v47, %v503_v45  ;;  %v448_v50 = vadd.f32 %v447_v48, %v446_v46 }
 0x35a   :  { %612 = vpush %v448_v50  ;;  %v506_v51 = vrot.slane %v505_v49, 1 }
 0x35c   :  { %v507_v52 = vadd.f32 %v506_v51, %v505_v49 }
 0x35e   :  { %614 = vpush %v507_v52 }
 0x38b   :  { %s613_s24 = spop %612 }
 0x38c   :  { %v450_v54 = vstv %s613_s24 }
 0x38f   :  { %s615_s25 = spop %614 }
 0x390   :  { %v509_v55 = vstv %s615_s25 }
 0x391   :  { %v511_v56 = vsub.f32 %v450_v54, %v509_v55 }
 0x393   :  { %v512_v58 = vmul.f32 0.5, %v511_v56 }
 0x395   :  { %v513_v59 = vadd.f32 %v512_v58, %v510_v57 }
 0x397   :  { %616 = vpush %v513_v59 }
 0x3c8   :  { %s617_s26 = spop %616 }
 0x3c9   :  { %517 = sst [smem:[#allocation5]] %s617_s26 }
 0x3ca   :  { %659 = shalt.err (!%p656_p7)
}
 0x3cb   :  { %s668_s0 = smov [#allocation5]  }
 0x3cc   :  { %525 = dma.smem_to_hbm %s668_s0, 16, %s869_s16, [#allocation3]  }
 0x3cd   :  { %662 = dma.done.wait [#allocation3], 16  }
 0x3ce   :  { %663 = vsyncadd [#allocation3], 4294967280 }
 0x3cf   :  { %529 = sfence }
 0x3d0   :  { %530 = vsyncpa [#allocation3], 1 }
 0x3d1   :  { %531 = vsyncpa [#allocation4], 1 }

</bundles_post_ra>
